<compile_context>
chip_gen: v5e
topology: v5e:2x2
jax: 0.10.0
libtpu: 0.0.40
codegen_flags: <defaults>
</compile_context>

<pallas_src>
import functools

import jax
import jax.numpy as jnp
from jax.experimental import pallas as pl
from jax.experimental.pallas import tpu as pltpu

LAMBDA_REG = 0.01

_LANES = 128
_SUBLANES = 8
_MAX_BLOCK_ROWS = 4096          # 4096*128*4B = 2 MiB per f32 input block
_PALLAS_MIN_ELEMENTS = 1 << 16  # below this, fused XLA elementwise+reduce wins


def _round_up(x, m):
    return ((x + m - 1) // m) * m


def _sincos_kernel(pred_ref, tgt_ref, acc_ref, *, block_rows, n_flat, tiles_per_shard):
    c = pl.program_id(0)   # shard (maps to a TensorCore on v7x) — "parallel"
    t = pl.program_id(1)   # tile within shard — "arbitrary" (running reduction)

    @pl.when(t == 0)
    def _init():
        acc_ref[...] = jnp.zeros_like(acc_ref)

    pred = pred_ref[...].astype(jnp.float32)   # (block_rows, 128)
    tgt = tgt_ref[...].astype(jnp.float32)

    # Global flat element index of every lane in this tile; masks the ragged tail
    # (flat pad region, partial last block, and the clamped extra tile of an
    # uneven shard split).
    tile_idx = c * tiles_per_shard + t
    row0 = tile_idx * block_rows
    r = jax.lax.broadcasted_iota(jnp.int32, (block_rows, _LANES), 0)
    l = jax.lax.broadcasted_iota(jnp.int32, (block_rows, _LANES), 1)
    flat_idx = (row0 + r) * _LANES + l
    valid = flat_idx < n_flat

    # Select (not multiply) so OOB garbage / NaN / Inf never propagates.
    pred = jnp.where(valid, pred, 0.0)
    tgt = jnp.where(valid, tgt, 0.0)

    # ---- MSE term: sum((pred - tgt)^2) over valid elements ----
    diff = pred - tgt
    mse_part = diff * diff

    # ---- unit-circle term ----
    # Flat layout is [sin0, cos0, sin1, cos1, ...]; 128 is even so sin sits on even
    # lanes and cos on odd lanes in every row.  roll(+1) along lanes brings the
    # even-lane sin^2 next to its odd-lane cos^2.
    y = pred * pred
    pair = y + pltpu.roll(y, shift=1, axis=1)     # at odd lane l: sin^2 + cos^2
    resid = pair - 1.0
    uc_mask = jnp.logical_and(valid, (l & 1) == 1)
    resid = jnp.where(uc_mask, resid, 0.0)
    uc_part = resid * resid

    # Reduce (block_rows,128) -> (8,128) with pure VPU vreg adds (the trailing
    # (8,128) of the reshape matches the hardware tiling, so no data movement).
    g = block_rows // _SUBLANES
    acc_ref[0, 0] += jnp.sum(mse_part.reshape(g, _SUBLANES, _LANES), axis=0)
    acc_ref[0, 1] += jnp.sum(uc_part.reshape(g, _SUBLANES, _LANES), axis=0)


def _as_lane_rows(x):
    """(N, 2) -> (rows, 128) flat row-major view; tiny flat pad only if 2N % 128 != 0."""
    flat = x.reshape(-1)                        # free bitcast (row-major)
    n_flat = flat.shape[0]
    rows = pl.cdiv(n_flat, _LANES)
    pad = rows * _LANES - n_flat
    if pad:
        # Unavoidable single copy for awkward N; pad values are masked in-kernel.
        flat = jnp.pad(flat, (0, pad))
    return flat.reshape(rows, _LANES)


def sincos_loss_pallas(predicted: jax.Array, target: jax.Array, *,
                       block_rows: int | None = None) -> jax.Array:
    """Pallas TPU implementation of SinCosLoss.forward. Returns a scalar f32."""
    assert predicted.shape == target.shape
    assert predicted.ndim == 2 and predicted.shape[1] == 2, "expects (N, 2) sin/cos pairs"
    n = predicted.shape[0]
    n_flat = 2 * n

    # Native dtype straight into the kernel (no wrapper upcast).
    pred2d = _as_lane_rows(predicted)
    tgt2d = _as_lane_rows(target)
    rows = pred2d.shape[0]

    itemsize = jnp.dtype(predicted.dtype).itemsize
    sublane_mult = max(_SUBLANES, 32 // max(itemsize, 1))   # f32: 8, bf16: 16, 8-bit: 32
    if block_rows is None:
        block_rows = min(_MAX_BLOCK_ROWS, _round_up(rows, sublane_mult))
    block_rows = _round_up(block_rows, sublane_mult)

    num_tiles = pl.cdiv(rows, block_rows)
    n_shards = 2 if num_tiles >= 2 else 1       # both TCs on v7x; harmless on v5e/v6e
    tiles_per_shard = pl.cdiv(num_tiles, n_shards)
    last_block = num_tiles - 1

    def in_map(c, t):
        # Clamp so the (at most one) extra tile of an uneven shard split never DMAs
        # past the array; its contribution is masked to zero in-kernel.
        return (jnp.minimum(c * tiles_per_shard + t, last_block), 0)

    kernel = functools.partial(
        _sincos_kernel,
        block_rows=block_rows,
        n_flat=n_flat,
        tiles_per_shard=tiles_per_shard,
    )

    partials = pl.pallas_call(
        kernel,
        out_shape=jax.ShapeDtypeStruct((n_shards, 2, _SUBLANES, _LANES), jnp.float32),
        grid_spec=pltpu.PrefetchScalarGridSpec(
            num_scalar_prefetch=0,
            grid=(n_shards, tiles_per_shard),
            in_specs=[
                pl.BlockSpec((block_rows, _LANES), in_map),
                pl.BlockSpec((block_rows, _LANES), in_map),
            ],
            # Resident per-shard accumulator block (constant over t) -> written back
            # to HBM once per shard; no SMEM scalar chain, no per-tile XLU reduce.
            out_specs=pl.BlockSpec((1, 2, _SUBLANES, _LANES),
                                   lambda c, t: (c, 0, 0, 0)),
        ),
        compiler_params=pltpu.CompilerParams(
            dimension_semantics=("parallel", "arbitrary"),
        ),
        cost_estimate=pl.CostEstimate(
            flops=12 * rows * _LANES,
            transcendentals=0,
            bytes_accessed=2 * rows * _LANES * itemsize
                           + n_shards * 2 * _SUBLANES * _LANES * 4,
        ),
    )(pred2d, tgt2d)

    # Tiny final reduce + normalization in XLA (8 KiB array).
    sums = jnp.sum(partials, axis=(0, 2, 3), dtype=jnp.float32)   # (mse_sum, uc_sum)
    mse = sums[0] / jnp.float32(n_flat)
    unit_circle = sums[1] / jnp.float32(n)
    return mse + LAMBDA_REG * unit_circle


def sincos_loss_reference(predicted: jax.Array, target: jax.Array) -> jax.Array:
    """Pure-JAX reference mirroring the PyTorch module (also the small-N path)."""
    p = predicted.astype(jnp.float32)
    t = target.astype(jnp.float32)
    mse = jnp.mean((p - t) ** 2)
    uc = jnp.mean((p[:, 0] ** 2 + p[:, 1] ** 2 - 1.0) ** 2)
    return (mse + LAMBDA_REG * uc).astype(jnp.float32)


def sincos_loss(predicted: jax.Array, target: jax.Array, *,
                force_pallas: bool = False) -> jax.Array:
    if not force_pallas and predicted.size < _PALLAS_MIN_ELEMENTS:
        # Tiny inputs: fixed dispatch/pipeline overhead dominates; fused XLA wins.
        return sincos_loss_reference(predicted, target)
    return sincos_loss_pallas(predicted, target)


if __name__ == "__main__":
    key = jax.random.PRNGKey(0)
    k1, k2, k3, k4 = jax.random.split(key, 4)

    # Small shape consistent with the module: a batch of 128 (sin, cos) pairs.
    # 2N % 128 == 0 -> zero-copy reshape path, single tile / single shard.
    N = 128
    pred = jax.random.normal(k1, (N, 2), dtype=jnp.float32)
    tgt = jax.random.normal(k2, (N, 2), dtype=jnp.float32)
    out = jax.block_until_ready(sincos_loss_pallas(pred, tgt))
    ref = jax.block_until_ready(sincos_loss_reference(pred, tgt))
    assert jnp.allclose(out, ref, rtol=1e-5, atol=1e-6), (out, ref)

    # Ragged path: 2N % 128 != 0, odd tile count -> exercises the in-kernel mask,
    # the partial last block, the two-shard split, and the clamped extra tile.
    N2 = 5000
    p2 = jax.random.normal(k3, (N2, 2), dtype=jnp.float32)
    t2 = jax.random.normal(k4, (N2, 2), dtype=jnp.float32)
    out2 = jax.block_until_ready(sincos_loss_pallas(p2, t2, block_rows=16))
    ref2 = jax.block_until_ready(sincos_loss_reference(p2, t2))
    assert jnp.allclose(out2, ref2, rtol=1e-5, atol=1e-6), (out2, ref2)

    # Native-dtype pass-through (bf16 halves HBM read bytes; math is f32 in-kernel).
    p3 = p2.astype(jnp.bfloat16)
    t3 = t2.astype(jnp.bfloat16)
    out3 = jax.block_until_ready(sincos_loss_pallas(p3, t3, block_rows=16))
    ref3 = jax.block_until_ready(sincos_loss_reference(p3, t3))
    assert jnp.allclose(out3, ref3, rtol=1e-4, atol=1e-5), (out3, ref3)

    print("KERNEL_OK")
</pallas_src>

<mosaic_0001>
module attributes {stable_mosaic.version = 11 : i64} {
  func.func @_sincos_kernel(%arg0: i32, %arg1: i32, %arg2: memref<8x128xf32, #tpu.memory_space<vmem>>, %arg3: memref<8x128xf32, #tpu.memory_space<vmem>>, %arg4: memref<1x2x8x128xf32, #tpu.memory_space<vmem>>) attributes {dimension_semantics = [#tpu.dimension_semantics<parallel>, #tpu.dimension_semantics<arbitrary>], iteration_bounds = array<i64: 1, 1>, scalar_prefetch = 0 : i64, scratch_operands = 0 : i64, tpu.core_type = #tpu.core_type<tc>, window_params = [{transform_indices = @transform_0, window_bounds = array<i64: 8, 128>}, {transform_indices = @transform_1, window_bounds = array<i64: 8, 128>}, {transform_indices = @transform_2, window_bounds = array<i64: 1, 2, 8, 128>}]} {
    %c0_i32 = arith.constant 0 : i32
    %0 = arith.cmpi eq, %arg1, %c0_i32 : i32
    %1 = arith.extui %0 : i1 to i32
    %c0_i32_0 = arith.constant 0 : i32
    %2 = arith.cmpi ne, %1, %c0_i32_0 : i32
    scf.if %2 {
      %cst_27 = arith.constant 0.000000e+00 : f32
      %52 = vector.broadcast %cst_27 : f32 to vector<1x2x8x128xf32>
      %c0_28 = arith.constant 0 : index
      %c0_29 = arith.constant 0 : index
      %c0_30 = arith.constant 0 : index
      %c0_31 = arith.constant 0 : index
      %53 = vector.load %arg4[%c0_28, %c0_29, %c0_30, %c0_31] : memref<1x2x8x128xf32, #tpu.memory_space<vmem>>, vector<1x2x8x128xf32>
      tpu.vector_store %arg4[%c0_28, %c0_29, %c0_30, %c0_31], %52 {strides = array<i32>} : memref<1x2x8x128xf32, #tpu.memory_space<vmem>>, vector<1x2x8x128xf32>,
    } else {
    }
    %c0 = arith.constant 0 : index
    %c0_1 = arith.constant 0 : index
    %3 = vector.load %arg2[%c0, %c0_1] : memref<8x128xf32, #tpu.memory_space<vmem>>, vector<8x128xf32>
    %c0_2 = arith.constant 0 : index
    %c0_3 = arith.constant 0 : index
    %4 = vector.load %arg3[%c0_2, %c0_3] : memref<8x128xf32, #tpu.memory_space<vmem>>, vector<8x128xf32>
    %c1_i32 = arith.constant 1 : i32
    %5 = arith.muli %arg0, %c1_i32 : i32
    %6 = arith.addi %5, %arg1 : i32
    %c8_i32 = arith.constant 8 : i32
    %7 = arith.muli %6, %c8_i32 : i32
    %8 = tpu.iota {dimensions = array<i32: 0>} : vector<8x128xi32>
    %9 = tpu.iota {dimensions = array<i32: 1>} : vector<8x128xi32>
    %10 = vector.broadcast %7 : i32 to vector<8x128xi32>
    %11 = arith.addi %10, %8 : vector<8x128xi32>
    %c128_i32 = arith.constant 128 : i32
    %12 = vector.broadcast %c128_i32 : i32 to vector<8x128xi32>
    %13 = arith.muli %11, %12 : vector<8x128xi32>
    %14 = arith.addi %13, %9 : vector<8x128xi32>
    %c256_i32 = arith.constant 256 : i32
    %15 = vector.broadcast %c256_i32 : i32 to vector<8x128xi32>
    %16 = arith.cmpi slt, %14, %15 : vector<8x128xi32>
    %cst = arith.constant 0.000000e+00 : f32
    %17 = vector.broadcast %cst : f32 to vector<8x128xf32>
    %18 = arith.select %16, %3, %17 : vector<8x128xi1>, vector<8x128xf32>
    %cst_4 = arith.constant 0.000000e+00 : f32
    %19 = vector.broadcast %cst_4 : f32 to vector<8x128xf32>
    %20 = arith.select %16, %4, %19 : vector<8x128xi1>, vector<8x128xf32>
    %21 = arith.subf %18, %20 : vector<8x128xf32>
    %22 = arith.mulf %21, %21 : vector<8x128xf32>
    %23 = arith.mulf %18, %18 : vector<8x128xf32>
    %c1_i32_5 = arith.constant 1 : i32
    %24 = tpu.dynamic_rotate %23 by %c1_i32_5 dim 1 : vector<8x128xf32>, i32 -> vector<8x128xf32>
    %25 = arith.addf %23, %24 : vector<8x128xf32>
    %cst_6 = arith.constant 1.000000e+00 : f32
    %26 = vector.broadcast %cst_6 : f32 to vector<8x128xf32>
    %27 = arith.subf %25, %26 : vector<8x128xf32>
    %c1_i32_7 = arith.constant 1 : i32
    %28 = vector.broadcast %c1_i32_7 : i32 to vector<8x128xi32>
    %29 = arith.andi %9, %28 : vector<8x128xi32>
    %c1_i32_8 = arith.constant 1 : i32
    %30 = vector.broadcast %c1_i32_8 : i32 to vector<8x128xi32>
    %31 = arith.cmpi eq, %29, %30 : vector<8x128xi32>
    %32 = arith.andi %16, %31 : vector<8x128xi1>
    %cst_9 = arith.constant 0.000000e+00 : f32
    %33 = vector.broadcast %cst_9 : f32 to vector<8x128xf32>
    %34 = arith.select %32, %27, %33 : vector<8x128xi1>, vector<8x128xf32>
    %35 = arith.mulf %34, %34 : vector<8x128xf32>
    %c0_10 = arith.constant 0 : index
    %c0_11 = arith.constant 0 : index
    %c0_12 = arith.constant 0 : index
    %c0_13 = arith.constant 0 : index
    %36 = vector.load %arg4[%c0_10, %c0_11, %c0_12, %c0_13] : memref<1x2x8x128xf32, #tpu.memory_space<vmem>>, vector<1x1x8x128xf32>
    %37 = vector.shape_cast %36 : vector<1x1x8x128xf32> to vector<8x128xf32>
    %38 = vector.shape_cast %22 : vector<8x128xf32> to vector<1x8x128xf32>
    %cst_14 = arith.constant dense<0.000000e+00> : vector<8x128xf32>
    %39 = vector.multi_reduction <add>, %38, %cst_14 [0] : vector<1x8x128xf32> to vector<8x128xf32>
    %40 = arith.addf %37, %39 : vector<8x128xf32>
    %c0_15 = arith.constant 0 : index
    %c0_16 = arith.constant 0 : index
    %c0_17 = arith.constant 0 : index
    %c0_18 = arith.constant 0 : index
    %41 = vector.load %arg4[%c0_15, %c0_16, %c0_17, %c0_18] : memref<1x2x8x128xf32, #tpu.memory_space<vmem>>, vector<1x1x8x128xf32>
    %42 = vector.shape_cast %41 : vector<1x1x8x128xf32> to vector<8x128xf32>
    %43 = vector.shape_cast %40 : vector<8x128xf32> to vector<1x1x8x128xf32>
    tpu.vector_store %arg4[%c0_15, %c0_16, %c0_17, %c0_18], %43 {strides = array<i32>} : memref<1x2x8x128xf32, #tpu.memory_space<vmem>>, vector<1x1x8x128xf32>,
    %c0_19 = arith.constant 0 : index
    %c1 = arith.constant 1 : index
    %c0_20 = arith.constant 0 : index
    %c0_21 = arith.constant 0 : index
    %44 = vector.load %arg4[%c0_19, %c1, %c0_20, %c0_21] : memref<1x2x8x128xf32, #tpu.memory_space<vmem>>, vector<1x1x8x128xf32>
    %45 = vector.shape_cast %44 : vector<1x1x8x128xf32> to vector<8x128xf32>
    %46 = vector.shape_cast %35 : vector<8x128xf32> to vector<1x8x128xf32>
    %cst_22 = arith.constant dense<0.000000e+00> : vector<8x128xf32>
    %47 = vector.multi_reduction <add>, %46, %cst_22 [0] : vector<1x8x128xf32> to vector<8x128xf32>
    %48 = arith.addf %45, %47 : vector<8x128xf32>
    %c0_23 = arith.constant 0 : index
    %c1_24 = arith.constant 1 : index
    %c0_25 = arith.constant 0 : index
    %c0_26 = arith.constant 0 : index
    %49 = vector.load %arg4[%c0_23, %c1_24, %c0_25, %c0_26] : memref<1x2x8x128xf32, #tpu.memory_space<vmem>>, vector<1x1x8x128xf32>
    %50 = vector.shape_cast %49 : vector<1x1x8x128xf32> to vector<8x128xf32>
    %51 = vector.shape_cast %48 : vector<8x128xf32> to vector<1x1x8x128xf32>
    tpu.vector_store %arg4[%c0_23, %c1_24, %c0_25, %c0_26], %51 {strides = array<i32>} : memref<1x2x8x128xf32, #tpu.memory_space<vmem>>, vector<1x1x8x128xf32>,
    return
  }
  func.func @transform_0(%arg0: i32, %arg1: i32) -> (i32, i32) {
    %c1_i32 = arith.constant 1 : i32
    %0 = arith.muli %arg0, %c1_i32 : i32
    %1 = arith.addi %0, %arg1 : i32
    %c0_i32 = arith.constant 0 : i32
    %2 = arith.minsi %1, %c0_i32 : i32
    %c0_i32_0 = arith.constant 0 : i32
    %c0_i32_1 = arith.constant 0 : i32
    return %2, %c0_i32_0 : i32, i32
  }
  func.func @transform_1(%arg0: i32, %arg1: i32) -> (i32, i32) {
    %c1_i32 = arith.constant 1 : i32
    %0 = arith.muli %arg0, %c1_i32 : i32
    %1 = arith.addi %0, %arg1 : i32
    %c0_i32 = arith.constant 0 : i32
    %2 = arith.minsi %1, %c0_i32 : i32
    %c0_i32_0 = arith.constant 0 : i32
    %c0_i32_1 = arith.constant 0 : i32
    return %2, %c0_i32_0 : i32, i32
  }
  func.func @transform_2(%arg0: i32, %arg1: i32) -> (i32, i32, i32, i32) {
    %c0_i32 = arith.constant 0 : i32
    %c0_i32_0 = arith.constant 0 : i32
    %c0_i32_1 = arith.constant 0 : i32
    %c0_i32_2 = arith.constant 0 : i32
    return %arg0, %c0_i32, %c0_i32_0, %c0_i32_1 : i32, i32, i32, i32
  }
}

</mosaic_0001>

<bundles_post_ra>
// kernel: tpu_custom_call.1
= control target key start
LH: loop header
LB: loop body
LE: loop exit
PB: predicated region body
PF: predicated region fallthrough
CT: control target
= control target key end

     0   :  { %7 = vsyncpa [#allocation3], 0  ;;  %s264_s0 = inlined_call_operand.hbm [shape: f32[2,128], index: 0, kind: input, shape index: {}]   ;;  %s265_s1 = inlined_call_operand.hbm [shape: f32[2,128], index: 1, kind: input, shape index: {}]   ;;  %s266_s2 = inlined_call_operand.hbm [shape: f32[1,2,8,128], index: 2, kind: output, shape index: {}]  }
   0x1   :  { %8 = vsyncpa [#allocation6], 0 }
   0x2   :  { %9 = vsyncpa [#allocation4], 0 }
   0x3   :  { %20 = vsyncadd [#allocation3], 96  ;;  %s25_s11 = sshll.u32 %s264_s0, 4  ;;  %s232_s12 = smov [#allocation2]   ;;  %s26_s11 = int_to_ptr.hbm [resolvable:$true] %s25_s11 }
   0x4   :  { %s27_s13 = sshll.u32 %s232_s12, 4  ;;  %s233_s14 = smov 32   ;;  %s28_s13 = int_to_ptr.vmem [resolvable:$true] %s27_s13 }
   0x5   :  { %s234_s15 = smov 2  }
   0x6   :  { %33 = dma.hbm_to_vmem [thread:$0]  %s26_s11, 32, %s28_s13, [#allocation3], %s233_s14, %s233_s14, %s234_s15  }
   0x7   :  { %44 = vsyncadd [#allocation6], 96  ;;  %s49_s18 = sshll.u32 %s265_s1, 4  ;;  %s235_s19 = smov [#allocation5]   ;;  %s50_s18 = int_to_ptr.hbm [resolvable:$true] %s49_s18 }
   0x8   :  { %s51_s20 = sshll.u32 %s235_s19, 4  ;;  %s52_s20 = int_to_ptr.vmem [resolvable:$true] %s51_s20 }
   0x9   :  { %57 = dma.hbm_to_vmem [thread:$0]  %s50_s18, 32, %s52_s20, [#allocation6], %s233_s14, %s233_s14, %s234_s15  }
   0xa   :  { %226 = dma.done.wait [#allocation3], 128  }
   0xb   :  { %227 = vsyncadd [#allocation3], 4294967168 }
   0xc   :  { %228 = dma.done.wait [#allocation6], 128  }
   0xd   :  { %229 = vsyncadd [#allocation6], 4294967168  ;;  %v88_v0 = vlaneseq  ;;  %v84_v5 = vld [vmem:[#allocation2] sm:$0xff]  ;;  %v85_v6 = vld [vmem:[#allocation5] sm:$0xff]  ;;  %s236_s0 = smov 1   ;;  %s237_s1 = smov [#allocation7]  }
   0xe   :  { %s124_s21 = sshll.u32 %s237_s1, 4  ;;  %s126_s24 = sshll.u32 %s266_s2, 4  ;;  %s125_s21 = int_to_ptr.vmem [resolvable:$true] %s124_s21  ;;  %s127_s24 = int_to_ptr.hbm [resolvable:$true] %s126_s24 }
   0xf   :  { %v89_v1 = vshrl.u32 %v88_v0, 7  ;;  %v91_v2 = vand.u32 127, %v88_v0  ;;  %s238_s25 = smov 128   ;;  %s239_s26 = smov 8  }
  0x11   :  { %v94_v3 = vmul.u32 128, %v89_v1  ;;  %v106_v12 = vand.u32 1, %v91_v2 }
  0x13   :  { %v95_v4 = vadd.s32 %v94_v3, %v91_v2  ;;  %vm107_vm1 = vcmp.eq.s32.totalorder %v106_v12, 1 }
  0x15   :  { %vm96_vm0 = vcmp.lt.s32.totalorder %v95_v4, 256 }
  0x16   :  { %v97_v7 = vsel %vm96_vm0, %v84_v5, 0.0  ;;  %v98_v8 = vsel %vm96_vm0, %v85_v6, 0.0  ;;  %vm108_vm2 = vmand %vm96_vm0, %vm107_vm1 }
  0x17   :  { %v99_v9 = vsub.f32 %v97_v7, %v98_v8  ;;  %v101_v10 = vmul.f32 %v97_v7, %v97_v7 }
  0x19   :  { %v100_v11 = vmul.f32 %v99_v9, %v99_v9  ;;  %102 = vrot.lane.b32.xlu0 %v101_v10, %s236_s0 }
  0x1b   :  { %114 = vst [vmem:[#allocation7] sm:$0xff] %v100_v11 }
  0x8b   :  { %v103_v13 = vpop.permute.xlu0 %102 }
  0x8c   :  { %v104_v14 = vadd.f32 %v103_v13, %v101_v10 }
  0x8e   :  { %v144_v15 = vadd.f32 -1.0, %v104_v14 }
  0x90   :  { %v109_v16 = vsel %vm108_vm2, %v144_v15, 0.0 }
  0x91   :  { %v110_v17 = vmul.f32 %v109_v16, %v109_v16 }
  0x93   :  { %119 = vst [vmem:[#allocation7 + $0x8] sm:$0xff] %v110_v17 }
  0x94   :  { %132 = dma.vmem_to_hbm [thread:$0]  %s125_s21, 256, %s127_s24, [#allocation4], %s238_s25, %s238_s25, %s239_s26  }
  0x95   :  { %230 = dma.done.wait [#allocation4], 256  }
  0x96   :  { %231 = vsyncadd [#allocation4], 4294967040 }
  0x97   :  { %137 = vsyncpa [#allocation3], 1 }
  0x98   :  { %138 = vsyncpa [#allocation6], 1 }
  0x99   :  { %139 = vsyncpa [#allocation4], 1 }

</bundles_post_ra>
